<compile_context>
chip_gen: v6e
topology: v6e:2x2x1
jax: 0.10.0
libtpu: 0.0.40
codegen_flags: <defaults>
</compile_context>

<pallas_src>
import jax
import jax.numpy as jnp
from jax.experimental import pallas as pl
from jax.experimental.pallas import tpu as pltpu

LN_EPS = 1e-5  # nn.LayerNorm default


def _round_up(x, m):
    return ((x + m - 1) // m) * m


def _linear_layer_kernel(x_ref, gamma_ref, beta_ref, w_ref, b_ref, o_ref, xn_ref):
    # x_ref:    (tm, D_in)  activations (resident across j)
    # gamma/beta: (1, D_in) LayerNorm params
    # w_ref:    (tn, D_in)  weight tile in torch (out, in) layout, compute dtype (bf16)
    # b_ref:    (1, tn)     bias tile (f32)
    # o_ref:    (tm, tn)    output tile
    # xn_ref:   (tm, D_in)  VMEM scratch caching the normalized+affine rows (compute dtype)

    # LayerNorm once per row tile: only when j == 0; every other j reuses the cache.
    @pl.when(pl.program_id(1) == 0)
    def _():
        x = x_ref[...].astype(jnp.float32)
        inv_d = jnp.float32(1.0 / x.shape[-1])
        # One-pass statistics (biased variance, same as torch.nn.LayerNorm).
        mean = jnp.sum(x, axis=-1, keepdims=True) * inv_d
        mean_sq = jnp.sum(x * x, axis=-1, keepdims=True) * inv_d
        var = mean_sq - mean * mean
        inv_std = jax.lax.rsqrt(var + LN_EPS)                       # EUP slot
        scale = inv_std * gamma_ref[...].astype(jnp.float32)        # (tm, D_in)
        shift = beta_ref[...].astype(jnp.float32) - mean * scale
        xn_ref[...] = (x * scale + shift).astype(xn_ref.dtype)

    # TODO(synk): nn.Dropout(p=0.1) is identity at inference; training-mode dropout not implemented.

    # Linear on the MXU: weight stays in torch (out, in) layout -> contract dim 1 of both
    # operands (transposed-RHS contraction is native on the MXU), f32 accumulation.
    y = jax.lax.dot_general(
        xn_ref[...],
        w_ref[...],
        dimension_numbers=(((1,), (1,)), ((), ())),
        preferred_element_type=jnp.float32,
    )
    y = y + b_ref[...].astype(jnp.float32)

    # ReLU
    o_ref[...] = jnp.maximum(y, 0.0).astype(o_ref.dtype)


def _vmem_limit_bytes():
    # Size the scoped VMEM limit to the generation: v7x has 64 MiB/TC, v5e/v6e have 128 MiB.
    cap = 64 * 1024 * 1024
    try:
        info = pltpu.get_tpu_info()
        cap = int(getattr(info, "vmem_capacity_bytes", 0) or cap)
    except Exception:
        pass
    return int(min(cap * 3 // 4, 96 * 1024 * 1024))


def _select_tiles(M, D_in, D_out, x_bytes, w_bytes, out_bytes, budget,
                  tile_m=512, tile_n=512):
    # Output-feature tile: lane-dense multiple of 128 (unmasked vst), or full D_out if small.
    if D_out <= 128:
        tn = D_out
    else:
        tn = min(_round_up(tile_n, 128), (D_out // 128) * 128)

    # Row tile: large (amortizes ~0.35us/step pipeline overhead & cuts weight re-stream
    # passes), multiple of 8 sublanes.
    tm = min(_round_up(tile_m, 8), _round_up(M, 8))
    # Megacore: i is the only "parallel" axis -> guarantee >= 2 i-steps whenever M >= 16.
    if M >= 16 and pl.cdiv(M, tm) < 2:
        tm = _round_up(pl.cdiv(M, 2), 8)

    def working_set(tm_, tn_):
        return (2 * tm_ * D_in * x_bytes        # x double buffer
                + 2 * tn_ * D_in * w_bytes      # weight double buffer
                + 2 * tm_ * tn_ * out_bytes     # output double buffer
                + tm_ * D_in * w_bytes          # cached xn scratch (compute dtype)
                + 2 * tm_ * D_in * 4            # in-kernel f32 LN temporaries
                + 2 * (2 * D_in + tn_) * 4)     # gamma / beta / bias

    # Shrink tm first (keeps lane-dense tn), then tn, until it fits the VMEM budget
    # (this is what drops tm to 256 on v7x for large D_in while keeping 512 on v5e/v6e).
    while working_set(tm, tn) > budget and tm > 8:
        tm = max(8, _round_up(tm // 2, 8))
    while working_set(tm, tn) > budget and tn > 128:
        tn = max(128, _round_up(tn // 2, 128))
    return tm, tn


def linear_layer_forward(x, gamma, beta, weight, bias, *,
                         tile_m=512, tile_n=512,
                         compute_dtype=jnp.bfloat16,
                         out_dtype=None):
    """Fused LayerNorm -> Dropout(eval) -> Linear -> ReLU.

    x: (N, L, D_in); weight: (D_out, D_in) torch layout (ideally pre-cast to
    `compute_dtype` once at setup time); bias: (D_out,).
    """
    N, L, D_in = x.shape
    D_out = weight.shape[0]
    M = N * L
    out_dtype = x.dtype if out_dtype is None else jnp.dtype(out_dtype)

    vmem_limit = _vmem_limit_bytes()
    tm, tn = _select_tiles(
        M, D_in, D_out,
        x.dtype.itemsize,
        jnp.dtype(compute_dtype).itemsize,
        jnp.dtype(out_dtype).itemsize,
        int(vmem_limit * 0.85),
        tile_m=tile_m, tile_n=tile_n,
    )

    # No wrapper-side padding: cdiv grid + Pallas boundary-block masking handle ragged
    # edges (garbage rows/cols in boundary blocks are never written to the output).
    grid = (pl.cdiv(M, tm), pl.cdiv(D_out, tn))

    x2 = x.reshape(M, D_in)
    # Weight should already be in compute dtype (pre-cast once); only cast if it isn't.
    w = weight if weight.dtype == jnp.dtype(compute_dtype) else weight.astype(compute_dtype)
    gamma2 = gamma.reshape(1, D_in)
    beta2 = beta.reshape(1, D_in)
    b2 = bias.reshape(1, D_out).astype(jnp.float32)

    # Advisory cost estimate for the XLA scheduler (weight is re-streamed once per row tile).
    cost = pl.CostEstimate(
        flops=2 * M * D_in * D_out,
        transcendentals=M,  # one rsqrt per row
        bytes_accessed=(x2.size * x2.dtype.itemsize
                        + grid[0] * w.size * w.dtype.itemsize
                        + b2.size * 4 + gamma2.size * 4 + beta2.size * 4
                        + M * D_out * out_dtype.itemsize),
    )

    # NOTE: D_in (the contraction axis) is kept whole in each block because LayerNorm needs
    # the full feature row anyway; add a K grid axis + f32 accumulator only if D_in is huge.
    out2 = pl.pallas_call(
        _linear_layer_kernel,
        out_shape=jax.ShapeDtypeStruct((M, D_out), out_dtype),
        grid_spec=pltpu.PrefetchScalarGridSpec(
            num_scalar_prefetch=0,
            grid=grid,
            in_specs=[
                pl.BlockSpec((tm, D_in), lambda i, j: (i, 0)),   # x rows (resident across j)
                pl.BlockSpec((1, D_in), lambda i, j: (0, 0)),    # gamma
                pl.BlockSpec((1, D_in), lambda i, j: (0, 0)),    # beta
                pl.BlockSpec((tn, D_in), lambda i, j: (j, 0)),   # weight tile (torch layout)
                pl.BlockSpec((1, tn), lambda i, j: (0, j)),      # bias tile
            ],
            out_specs=pl.BlockSpec((tm, tn), lambda i, j: (i, j)),
            scratch_shapes=[pltpu.VMEM((tm, D_in), compute_dtype)],  # cached LN output
        ),
        compiler_params=pltpu.CompilerParams(
            # j must iterate sequentially ("arbitrary") so j == 0 fills the xn cache before
            # the remaining output-feature tiles read it; i carries megacore parallelism.
            dimension_semantics=("parallel", "arbitrary"),
            vmem_limit_bytes=vmem_limit,
        ),
        cost_estimate=cost,
    )(x2, gamma2, beta2, w, b2)

    return out2.reshape(N, L, D_out)


def _reference(x, gamma, beta, weight, bias):
    mean = jnp.mean(x, axis=-1, keepdims=True)
    var = jnp.mean((x - mean) ** 2, axis=-1, keepdims=True)
    xn = (x - mean) / jnp.sqrt(var + LN_EPS) * gamma + beta
    y = xn @ weight.T + bias
    return jnp.maximum(y, 0.0)


if __name__ == "__main__":
    # Small shapes consistent with the (N, L, D) forward of the PyTorch module.
    N, L, D_in, D_out = 2, 8, 32, 64

    key = jax.random.PRNGKey(0)
    kx, kw, kb = jax.random.split(key, 3)

    x = jax.random.normal(kx, (N, L, D_in), dtype=jnp.float32)

    # Parameter init (shapes from nn.LayerNorm(in_hsz) and nn.Linear(in_hsz, out_hsz)).
    gamma = jnp.ones((D_in,), dtype=jnp.float32)
    beta = jnp.zeros((D_in,), dtype=jnp.float32)
    bound = float(D_in) ** -0.5
    weight = jax.random.uniform(kw, (D_out, D_in), dtype=jnp.float32,
                                minval=-bound, maxval=bound)
    bias = jax.random.uniform(kb, (D_out,), dtype=jnp.float32,
                              minval=-bound, maxval=bound)

    # Pre-cast the (static, inference) weight to the MXU compute dtype once.
    weight_bf16 = weight.astype(jnp.bfloat16)

    out = linear_layer_forward(x, gamma, beta, weight_bf16, bias,
                               out_dtype=jnp.float32)
    out = jax.block_until_ready(out)

    ref = _reference(x, gamma, beta, weight, bias)
    assert out.shape == (N, L, D_out)
    # bf16 MXU matmul with f32 accumulation -> small deviation vs pure-f32 reference.
    assert jnp.allclose(out, ref, atol=2e-2, rtol=2e-2), "mismatch vs reference"

    print("KERNEL_OK")
</pallas_src>

<mosaic_0001>
module attributes {stable_mosaic.version = 11 : i64} {
  func.func @_linear_layer_kernel(%arg0: i32, %arg1: i32, %arg2: memref<8x32xf32, #tpu.memory_space<vmem>>, %arg3: memref<1x32xf32, #tpu.memory_space<vmem>>, %arg4: memref<1x32xf32, #tpu.memory_space<vmem>>, %arg5: memref<64x32xbf16, #tpu.memory_space<vmem>>, %arg6: memref<1x64xf32, #tpu.memory_space<vmem>>, %arg7: memref<8x64xf32, #tpu.memory_space<vmem>>, %arg8: memref<8x32xbf16, #tpu.memory_space<vmem>>) attributes {dimension_semantics = [#tpu.dimension_semantics<parallel>, #tpu.dimension_semantics<arbitrary>], iteration_bounds = array<i64: 2, 1>, scalar_prefetch = 0 : i64, scratch_operands = 1 : i64, tpu.core_type = #tpu.core_type<tc>, window_params = [{transform_indices = @transform_0, window_bounds = array<i64: 8, 32>}, {pipeline_mode = #tpu.pipeline_mode<synchronous>, transform_indices = @transform_1, window_bounds = array<i64: 1, 32>}, {pipeline_mode = #tpu.pipeline_mode<synchronous>, transform_indices = @transform_2, window_bounds = array<i64: 1, 32>}, {transform_indices = @transform_3, window_bounds = array<i64: 64, 32>}, {transform_indices = @transform_4, window_bounds = array<i64: 1, 64>}, {transform_indices = @transform_5, window_bounds = array<i64: 8, 64>}]} {
    %c0_i32 = arith.constant 0 : i32
    %0 = arith.cmpi eq, %arg1, %c0_i32 : i32
    %1 = arith.extui %0 : i1 to i32
    %c0_i32_0 = arith.constant 0 : i32
    %2 = arith.cmpi ne, %1, %c0_i32_0 : i32
    scf.if %2 {
      %c0_9 = arith.constant 0 : index
      %c0_10 = arith.constant 0 : index
      %12 = vector.load %arg2[%c0_9, %c0_10] : memref<8x32xf32, #tpu.memory_space<vmem>>, vector<8x32xf32>
      %cst_11 = arith.constant dense<0.000000e+00> : vector<8xf32>
      %13 = vector.multi_reduction <add>, %12, %cst_11 [1] : vector<8x32xf32> to vector<8xf32>
      %14 = vector.shape_cast %13 : vector<8xf32> to vector<8x1xf32>
      %cst_12 = arith.constant 3.125000e-02 : f32
      %15 = vector.broadcast %cst_12 : f32 to vector<8x1xf32>
      %16 = arith.mulf %14, %15 : vector<8x1xf32>
      %17 = arith.mulf %12, %12 : vector<8x32xf32>
      %cst_13 = arith.constant dense<0.000000e+00> : vector<8xf32>
      %18 = vector.multi_reduction <add>, %17, %cst_13 [1] : vector<8x32xf32> to vector<8xf32>
      %19 = vector.shape_cast %18 : vector<8xf32> to vector<8x1xf32>
      %cst_14 = arith.constant 3.125000e-02 : f32
      %20 = vector.broadcast %cst_14 : f32 to vector<8x1xf32>
      %21 = arith.mulf %19, %20 : vector<8x1xf32>
      %22 = arith.mulf %16, %16 : vector<8x1xf32>
      %23 = arith.subf %21, %22 : vector<8x1xf32>
      %cst_15 = arith.constant 9.99999974E-6 : f32
      %24 = vector.broadcast %cst_15 : f32 to vector<8x1xf32>
      %25 = arith.addf %23, %24 : vector<8x1xf32>
      %26 = math.rsqrt %25 : vector<8x1xf32>
      %c0_16 = arith.constant 0 : index
      %c0_17 = arith.constant 0 : index
      %27 = vector.load %arg3[%c0_16, %c0_17] : memref<1x32xf32, #tpu.memory_space<vmem>>, vector<1x32xf32>
      %28 = vector.broadcast %26 : vector<8x1xf32> to vector<8x32xf32>
      %29 = vector.broadcast %27 : vector<1x32xf32> to vector<8x32xf32>
      %30 = arith.mulf %28, %29 : vector<8x32xf32>
      %c0_18 = arith.constant 0 : index
      %c0_19 = arith.constant 0 : index
      %31 = vector.load %arg4[%c0_18, %c0_19] : memref<1x32xf32, #tpu.memory_space<vmem>>, vector<1x32xf32>
      %32 = vector.broadcast %16 : vector<8x1xf32> to vector<8x32xf32>
      %33 = arith.mulf %32, %30 : vector<8x32xf32>
      %34 = vector.broadcast %31 : vector<1x32xf32> to vector<8x32xf32>
      %35 = arith.subf %34, %33 : vector<8x32xf32>
      %36 = arith.mulf %12, %30 : vector<8x32xf32>
      %37 = arith.addf %36, %35 : vector<8x32xf32>
      %38 = arith.truncf %37 : vector<8x32xf32> to vector<8x32xbf16>
      %c0_20 = arith.constant 0 : index
      %c0_21 = arith.constant 0 : index
      %39 = vector.load %arg8[%c0_20, %c0_21] : memref<8x32xbf16, #tpu.memory_space<vmem>>, vector<8x32xbf16>
      tpu.vector_store %arg8[%c0_20, %c0_21], %38 {strides = array<i32>} : memref<8x32xbf16, #tpu.memory_space<vmem>>, vector<8x32xbf16>,
    } else {
    }
    %c0 = arith.constant 0 : index
    %c0_1 = arith.constant 0 : index
    %3 = vector.load %arg8[%c0, %c0_1] : memref<8x32xbf16, #tpu.memory_space<vmem>>, vector<8x32xbf16>
    %c0_2 = arith.constant 0 : index
    %c0_3 = arith.constant 0 : index
    %4 = vector.load %arg5[%c0_2, %c0_3] : memref<64x32xbf16, #tpu.memory_space<vmem>>, vector<64x32xbf16>
    %cst = arith.constant dense<0.000000e+00> : vector<8x64xf32>
    %5 = tpu.matmul %3, %4, %cst {dimension_numbers = #tpu.dot_dimension_numbers<[1], [1], [0], [0], [0, 0, 1, 0], [], []>} : vector<8x32xbf16>, vector<64x32xbf16>, vector<8x64xf32> -> vector<8x64xf32>
    %c0_4 = arith.constant 0 : index
    %c0_5 = arith.constant 0 : index
    %6 = vector.load %arg6[%c0_4, %c0_5] : memref<1x64xf32, #tpu.memory_space<vmem>>, vector<1x64xf32>
    %7 = vector.broadcast %6 : vector<1x64xf32> to vector<8x64xf32>
    %8 = arith.addf %5, %7 : vector<8x64xf32>
    %cst_6 = arith.constant 0.000000e+00 : f32
    %9 = vector.broadcast %cst_6 : f32 to vector<8x64xf32>
    %10 = arith.maximumf %8, %9 : vector<8x64xf32>
    %c0_7 = arith.constant 0 : index
    %c0_8 = arith.constant 0 : index
    %11 = vector.load %arg7[%c0_7, %c0_8] : memref<8x64xf32, #tpu.memory_space<vmem>>, vector<8x64xf32>
    tpu.vector_store %arg7[%c0_7, %c0_8], %10 {strides = array<i32>} : memref<8x64xf32, #tpu.memory_space<vmem>>, vector<8x64xf32>,
    return
  }
  func.func @transform_0(%arg0: i32, %arg1: i32) -> (i32, i32) {
    %c0_i32 = arith.constant 0 : i32
    %c0_i32_0 = arith.constant 0 : i32
    return %arg0, %c0_i32 : i32, i32
  }
  func.func @transform_1(%arg0: i32, %arg1: i32) -> (i32, i32) {
    %c0_i32 = arith.constant 0 : i32
    %c0_i32_0 = arith.constant 0 : i32
    %c0_i32_1 = arith.constant 0 : i32
    return %c0_i32, %c0_i32_0 : i32, i32
  }
  func.func @transform_2(%arg0: i32, %arg1: i32) -> (i32, i32) {
    %c0_i32 = arith.constant 0 : i32
    %c0_i32_0 = arith.constant 0 : i32
    %c0_i32_1 = arith.constant 0 : i32
    return %c0_i32, %c0_i32_0 : i32, i32
  }
  func.func @transform_3(%arg0: i32, %arg1: i32) -> (i32, i32) {
    %c0_i32 = arith.constant 0 : i32
    %c0_i32_0 = arith.constant 0 : i32
    return %arg1, %c0_i32 : i32, i32
  }
  func.func @transform_4(%arg0: i32, %arg1: i32) -> (i32, i32) {
    %c0_i32 = arith.constant 0 : i32
    %c0_i32_0 = arith.constant 0 : i32
    return %c0_i32, %arg1 : i32, i32
  }
  func.func @transform_5(%arg0: i32, %arg1: i32) -> (i32, i32) {
    %c0_i32 = arith.constant 0 : i32
    return %arg0, %arg1 : i32, i32
  }
}

</mosaic_0001>

<bundles_post_ra>
// kernel: tpu_custom_call.1
= control target key start
LH: loop header
LB: loop body
LE: loop exit
PB: predicated region body
PF: predicated region fallthrough
CT: control target
= control target key end

     0   :  { %10 = vsyncpa [#allocation4], 0  ;;  %s868_s0 = inlined_call_operand.vmem [shape: f32[16,32], index: 0, kind: input, shape index: {}]   ;;  %s869_s1 = inlined_call_operand.vmem [shape: f32[1,32], index: 1, kind: input, shape index: {}]   ;;  %s870_s2 = inlined_call_operand.vmem [shape: f32[1,32], index: 2, kind: input, shape index: {}]   ;;  %s871_s3 = inlined_call_operand.vmem [shape: bf16[64,32], index: 3, kind: input, shape index: {}]   ;;  %s872_s4 = inlined_call_operand.vmem [shape: f32[1,64], index: 4, kind: input, shape index: {}]   ;;  %s873_s5 = inlined_call_operand.hbm [shape: f32[16,64], index: 5, kind: output, shape index: {}]  }
   0x1   :  { %12 = vsyncpa [#allocation4 + $0x1], 0  ;;  %s729_s18 = smov 0   ;;  %s731_s19 = smov 0  }
   0x2   :  { %s733_s20 = smov 0   ;;  %s735_s21 = smov 0  }
   0x3   :  { %s737_s22 = smov 0   ;;  %s739_s23 = smov 0  }
   0x4 LB: > { %s517_s24 = sadd.s32 4294967295, %s694_s23   ;;  %s518_s25 = sadd.s32 4294967294, %s694_s23   ;;  %s694_s23 = sphi %s739_s23, %s18_s23   ;;  %s690_s22 = sphi %s737_s22, %s880_s22   ;;  %s686_s21 = sphi %s735_s21, %s879_s21   ;;  %s682_s20 = sphi %s733_s20, %s878_s20   ;;  %s678_s19 = sphi %s731_s19, %s877_s19   ;;  %s674_s18 = sphi %s729_s18, %s876_s18  }
   0x5   : > { %s30_s26 = sadd.s32 1, %s690_s22  ;;  %s159_s27 = sadd.s32 1, %s682_s20 }
   0x6   : > { %p32_p0 = scmp.ge.s32.totalorder %s30_s26, 2  ;;  %p169_p1 = scmp.ne.s32.totalorder %s682_s20, %s678_s19 }
   0x7   : > { %p170_p2 = scmp.eq.s32.totalorder %s517_s24, 1  ;;  %p175_p3 = scmp.ne.s32.totalorder %s678_s19, %s674_s18 }
   0x8   : > { %s882_s26 = smov (%p32_p0, %s30_s26), 0  ;;  %p176_p5 = scmp.eq.s32.totalorder %s518_s25, 1 }
   0x9   : > { %p769_p4 = por %p170_p2, %p169_p1  ;;  %s154_s29 = ssub.s32 %s690_s22, %s882_s26 }
   0xa   : > { %p523_p6 = scmp.ge.s32.totalorder %s694_s23, 1  ;;  %p157_p7 = scmp.eq.s32.totalorder %s154_s29, 0 }
   0xb   : > { %p776_p8 = por %p176_p5, %p175_p3  ;;  %p222_p9 = scmp.lt.s32.totalorder %s694_s23, 3 }
   0xc   : > { %s782_s6 = scalar_select %p157_p7, %s682_s20, %s159_s27  }
   0xd   : > { %p223_p10 = pnand %p523_p6, %p222_p9 }
   0xe   : > { %p257_p11 = scmp.lt.s32.totalorder (!%p223_p10), %s686_s21, 1  ;;  %s254_s9 = sand.u32 (!%p223_p10), 1, %s678_s19  }
   0xf   : > { %226 = sbr.rel (%p223_p10) target bundleno = 417 (0x1a1), region = 40  ;;  %s524_s10 = sshll.u32 (!%p223_p10), %s254_s9, 3 }
  0x10   : > { %s535_s13 = sshll.u32 (!%p223_p10), %s686_s21, 7  ;;  %s256_s14 = scalar_lea.vmem (!%p223_p10), [#allocation3], %s524_s10 }
  0x11   : > { %s422_s15 = sshll.u32 (!%p223_p10), %s256_s14, 4  ;;  %s822_s24 = scalar_lea.hbm (!%p223_p10), %s873_s5, %s535_s13  ;;  %s824_s15 = int_to_ptr.vmem [resolvable:$true] %s422_s15 }
  0x12   : > { %s618_s25 = scalar_lea.vmem (!%p223_p10), %s824_s15, 128  ;;  %s698_s27 = smov (!%p223_p10), [#allocation3]  }
  0x13   : > { %p619_p12 = scmp.ne.s32.totalorder (!%p223_p10), %s824_s15, %s618_s25  ;;  %s622_s29 = sshll.u32 (!%p223_p10), %s698_s27, 4  ;;  %s623_s29 = int_to_ptr.vmem [resolvable:$false] %s622_s29 }
  0x14   : > { %s258_s7 = scalar_select %p257_p11, %s686_s21, 1  ;;  %vm276_vm0 = vcmask 261120   ;;  %v612_v4 = vld [vmem:[%s871_s3 + $0x18] sm:$0xff]   ;;  %v696_v5 = vmov 0.0   ;;  %v613_v7 = vld [vmem:[%s871_s3 + $0x10] sm:$0xff]   ;;  %v614_v9 = vld [vmem:[%s871_s3 + $0x8] sm:$0xff]  }
  0x15   : > { %543 = vmatprep.subr.bf16.mxu0 %v696_v5  ;;  %v362_v6 = vsel %vm276_vm0, %v612_v4, 0  ;;  %v359_v8 = vsel %vm276_vm0, %v613_v7, 0  ;;  %v356_v10 = vsel %vm276_vm0, %v614_v9, 0  ;;  %v615_v11 = vld [vmem:[%s871_s3] sm:$0xff]   ;;  %vm697_vm1 = vmmov 0   ;;  %s408_s21 = scalar_lea.sflag [#allocation4], %s254_s9  ;;  %p620_p13 = pnand %p619_p12, %p769_p4 }
  0x16   : > { %s525_s8 = sshll.u32 %s258_s7, 3  ;;  %544 = vmatpush3.bf16.xpose.msra.mxu0 %v362_v6  ;;  %v353_v12 = vsel %vm276_vm0, %v615_v11, 0  ;;  %551 = vmatprep.mubr.msk.bf16.mxu0 %vm697_vm1, %v696_v5  ;;  %v526_v20 = vld [vmem:[%s869_s1] ss:$0 sm:$0xff]  ;;  %vm310_vm2 = vcmask 257024   ;;  %vm405_vm3 = vcmask 523264   ;;  %p625_p1 = scmp.lt.s32.totalorder %s824_s15, %s623_s29 }
  0x17   : > { %s260_s11 = scalar_lea.vmem %s868_s0, %s525_s8  ;;  %545 = vmatprep.subr.bf16.mxu0 %v696_v5  ;;  %v527_v23 = vld [vmem:[%s870_s2] ss:$0 sm:$0xff]  ;;  %p621_p0 = pneg %p620_p13 }
  0x18   : > { %v275_v0 = vld [vmem:[%s260_s11] sm:$0xff]  ;;  %s624_s7 = scalar_lea.vmem %s623_s29, 256 }
  0x19   : > { %v277_v1 = vsel %vm276_vm0, %v275_v0, 0.0  ;;  %v281_v2 = vmul.f32 %v275_v0, %v275_v0  ;;  %v528_v30 = vld [vmem:[%s872_s4] ss:$0 sm:$0xff]  ;;  %p626_p2 = scmp.lt.s32.totalorder %s624_s7, %s618_s25 }
  0x1a   : > { %278 = vadd.xlane.f32.xlu0 %v277_v1 }
  0x1b   : > { %v282_v3 = vsel %vm276_vm0, %v281_v2, 0.0  ;;  %p627_p3 = por %p626_p2, %p625_p1 }
  0x1d   : > { %p628_p5 = pnand %p627_p3, %p621_p0 }
  0x1e   : > { %283 = vadd.xlane.f32.xlu0 %v282_v3  ;;  %546 = vmatpush3.bf16.xpose.msra.mxu0 %v359_v8 }
  0x1f   : > { %547 = vmatprep.subr.bf16.mxu0 %v696_v5 }
  0x26   : > { %548 = vmatpush3.bf16.xpose.msra.mxu0 %v356_v10 }
  0x27   : > { %549 = vmatprep.subr.bf16.mxu0 %v696_v5 }
  0x2e   : > { %550 = vmatpush3.bf16.xpose.msra.mxu0 %v353_v12 }
  0xa3   : > { %v279_v13 = vpop.xlane.xlu0 %278 }
  0xa4   : > { %v280_v14 = vmul.f32 0.03125, %v279_v13 }
  0xa6   : > { %v286_v16 = vmul.f32 %v280_v14, %v280_v14 }
  0xa7   : > { %v284_v15 = vpop.xlane.xlu0 %283 }
  0xa8   : > { %v285_v17 = vmul.f32 0.03125, %v284_v15 }
  0xaa   : > { %v287_v18 = vsub.f32 %v285_v17, %v286_v16 }
  0xac   : > { %v288_v19 = vadd.f32 1e-05, %v287_v18 }
  0xae   : > { %616 = vrsqrt.f32 %v288_v19 }
  0xbb   : > { %v617_v21 = vpop.eup %616 }
  0xbc   : > { %v297_v22 = vmul.f32 %v617_v21, %v526_v20 }
  0xbe   : > { %v299_v24 = vmul.f32 %v297_v22, %v280_v14  ;;  %v307_v26 = vmul.f32 %v297_v22, %v275_v0 }
  0xc0   : > { %v306_v25 = vsub.f32 %v527_v23, %v299_v24 }
  0xc2   : > { %v308_v27 = vadd.f32 %v307_v26, %v306_v25 }
  0xc4   : > { %v309_v28 = vpack.c.bf16 %v308_v27, %v308_v27 }
  0xc6   : > { %311 = vst.msk [vmem:[#allocation2] sm:$0xf] %vm310_vm2, %v309_v28 }
  0xcd   : > { %v312_v29 = vld [vmem:[#allocation2] sm:$0xf] }
  0xce   : > { %552 = vmatmul.mubr.msk.bf16.vlgmr.msra.gmra.mxu0 %vm276_vm0, %v312_v29 }
 0x18e   : > { %v398_v31 = vpop.f32.mrf.mxu0 }
 0x18f   : > { %v399_v32 = vadd.f32 %v528_v30, %v398_v31 }
 0x190   : > { %v553_v33 = vpop.f32.mrf.mxu0 }
 0x191   : > { %v404_v34 = vmax.f32 %v399_v32, 0.0 }
 0x192   : > { %v401_v35 = vpop.f32.mrf.mxu0 }
 0x193   : > { %406 = vst.msk [vmem:[%s256_s14] sm:$0xff] %vm405_vm3, %v404_v34 }
 0x194   : > { %v554_v36 = vpop.f32.mrf.mxu0 }
 0x195   : > { %631 = shalt.err (!%p628_p5)
}
 0x196   : > { %s632_s8 = scalar_lea.hbm %s822_s24, 128  ;;  %s636_s11 = scalar_lea.hbm %s873_s5, 256 }
 0x197   : > { %p633_p6 = scmp.ne.s32.totalorder %s822_s24, %s632_s8  ;;  %p637_p10 = scmp.lt.s32.totalorder %s822_s24, %s873_s5 }
 0x198   : > { %p638_p11 = scmp.lt.s32.totalorder %s636_s11, %s632_s8 }
 0x199   : > { %p634_p7 = pnand %p633_p6, %p769_p4 }
 0x19a   : > { %p639_p12 = por %p638_p11, %p637_p10 }
 0x19b   : > { %p635_p9 = pneg %p634_p7 }
 0x19d   : > { %p640_p13 = pnand %p639_p12, %p635_p9 }
 0x19f   : > { %643 = shalt.err (!%p640_p13)
}
 0x1a0   : > { %555 = dma.vmem_to_hbm [thread:$0]  (%p769_p4), %s824_s15, 128, %s822_s24, %s408_s21  }
 0x1a1 PF: > { %p561_p0 = scmp.ge.s32.totalorder %s694_s23, 2  ;;  %s434_s14 = sand.u32 1, %s674_s18  }
 0x1a2   : > { %s435_s16 = scalar_lea.sflag [#allocation4], %s434_s14 }
 0x1a3   : > { %p558_p1 = pnand %p561_p0, %p776_p8 }
 0x1a5   : > { %p559_p2 = pneg %p558_p1 }
 0x1a7   : > { %669 = dma.done.wait (%p559_p2), %s435_s16, 128  }
 0x1a8   : > { %671 = vsyncadd (%p559_p2), %s435_s16, 4294967168  ;;  %s18_s23 = sadd.s32 1, %s694_s23   ;;  %s876_s18 = smov %s678_s19 }
 0x1a9   : > { %p15_p3 = scmp.ge.s32.totalorder %s18_s23, 4   ;;  %s877_s19 = smov %s682_s20 }
 0x1aa   : > { %s878_s20 = smov %s782_s6  ;;  %s879_s21 = smov %s690_s22 }
 0x1ab   : > { %s880_s22 = smov %s882_s26  ;;  %17 = sbr.rel (!%p15_p3) target bundleno = 4 (0x4), region = 85 }
 0x1b0   :  { %440 = vsyncpa [#allocation4], 1 }
 0x1b1   :  { %442 = vsyncpa [#allocation4 + $0x1], 1 }

</bundles_post_ra>
